<compile_context>
chip_gen: v7x
topology: tpu7x:2x2x1
jax: 0.10.0
libtpu: 0.0.40
codegen_flags: <defaults>
</compile_context>

<pallas_src>
import functools

import jax
import jax.numpy as jnp
from jax.experimental import pallas as pl
from jax.experimental.pallas import tpu as pltpu


VMEM_LIMIT = 32 * 1024 * 1024  # conservative: fits v5e/v6e/v7x scoped budgets


# ------------------------------ small helpers -------------------------------

def _round_up(x, m):
    return (x + m - 1) // m * m


def _pick_tile(extent, candidates):
    for c in candidates:
        if extent % c == 0:
            return c
    return 128


def _pick_m_tile(mp, row_bytes, budget=2 << 20):
    # largest M-tile (<=1024) that divides mp and keeps one tile under `budget`
    best = 128
    for c in (256, 512, 1024):
        if mp % c == 0 and c * row_bytes <= budget:
            best = c
    return best


def _pad2(x, d0, d1):
    p0 = d0 - x.shape[0]
    p1 = d1 - x.shape[1]
    if p0 or p1:
        x = jnp.pad(x, ((0, p0), (0, p1)))
    return x


# ------------------------------ Pallas kernels -------------------------------

def _matmul_kernel(a_ref, b_ref, o_ref, acc_ref):
    # grid = (i over M, j over N, k over K); k is the reduction axis.
    @pl.when(pl.program_id(2) == 0)
    def _():
        acc_ref[...] = jnp.zeros_like(acc_ref)

    acc_ref[...] += jnp.dot(a_ref[...], b_ref[...],
                            preferred_element_type=jnp.float32)

    @pl.when(pl.program_id(2) == pl.num_programs(2) - 1)
    def _():
        o_ref[...] = acc_ref[...].astype(o_ref.dtype)


def _bn_stats_kernel(x_ref, sum_ref, sq_ref):
    # Accumulate per-channel sum / sumsq over M-tiles (output-resident accum).
    @pl.when(pl.program_id(0) == 0)
    def _():
        sum_ref[...] = jnp.zeros_like(sum_ref)
        sq_ref[...] = jnp.zeros_like(sq_ref)

    x = x_ref[...]
    sum_ref[...] += jnp.sum(x, axis=0, keepdims=True)
    sq_ref[...] += jnp.sum(x * x, axis=0, keepdims=True)


def _affine_kernel(x_ref, sc_ref, sh_ref, o_ref, *, relu):
    y = x_ref[...] * sc_ref[...] + sh_ref[...]
    if relu:
        y = jnp.maximum(y, 0.0)
    o_ref[...] = y


def _affine_add_relu_kernel(x_ref, r_ref, sc_ref, sh_ref, o_ref):
    o_ref[...] = jnp.maximum(
        x_ref[...] * sc_ref[...] + sh_ref[...] + r_ref[...], 0.0)


def _maxpool_kernel(t_ref, o_ref):
    # t: (9, TBM, C) window taps -> max over taps.
    o_ref[...] = jnp.max(t_ref[...], axis=0)


# ------------------------------ matmul wrapper -------------------------------

def _matmul(a, b):
    """out[m, n] = sum_k a[m, k] * b[k, n]; bf16 MXU inputs, f32 output."""
    M, K = a.shape
    N = b.shape[1]
    Mp = _round_up(M, 128)
    Kp = _round_up(K, 128)
    Np = _round_up(N, 128)
    TM = _pick_tile(Mp, (512, 256, 128))
    TN = _pick_tile(Np, (256, 128))
    TK = _pick_tile(Kp, (1024, 512, 256, 128))

    a = _pad2(a.astype(jnp.bfloat16), Mp, Kp)
    b = _pad2(b.astype(jnp.bfloat16), Kp, Np)

    out = pl.pallas_call(
        _matmul_kernel,
        out_shape=jax.ShapeDtypeStruct((Mp, Np), jnp.float32),
        grid_spec=pltpu.PrefetchScalarGridSpec(
            num_scalar_prefetch=0,
            grid=(Mp // TM, Np // TN, Kp // TK),
            in_specs=[
                pl.BlockSpec((TM, TK), lambda i, j, k: (i, k)),
                pl.BlockSpec((TK, TN), lambda i, j, k: (k, j)),
            ],
            out_specs=pl.BlockSpec((TM, TN), lambda i, j, k: (i, j)),
            scratch_shapes=[pltpu.VMEM((TM, TN), jnp.float32)]),
        compiler_params=pltpu.CompilerParams(
            dimension_semantics=("parallel", "parallel", "arbitrary"),
            vmem_limit_bytes=VMEM_LIMIT),
    )(a, b)
    return out[:M, :N]


# ------------------------------ conv wrappers --------------------------------

def _extract_patches(x, kh, kw, stride, dilation, padding, pad_value=0.0):
    """Returns list of kh*kw strided-slice taps, each (N, OH, OW, C)."""
    N, H, W, C = x.shape
    oh = (H + 2 * padding - dilation * (kh - 1) - 1) // stride + 1
    ow = (W + 2 * padding - dilation * (kw - 1) - 1) // stride + 1
    if padding > 0:
        x = jnp.pad(x, ((0, 0), (padding, padding), (padding, padding), (0, 0)),
                    constant_values=pad_value)
    taps = []
    for i in range(kh):
        for j in range(kw):
            h0, w0 = i * dilation, j * dilation
            taps.append(jax.lax.slice(
                x, (0, h0, w0, 0),
                (N, h0 + (oh - 1) * stride + 1, w0 + (ow - 1) * stride + 1, C),
                (1, stride, stride, 1)))
    return taps, oh, ow


@functools.partial(jax.jit, static_argnames=("stride", "dilation", "padding"))
def conv2d(x, w, *, stride=1, dilation=1, padding=0):
    """NHWC conv, no bias. w layout: (KH, KW, Cin, Cout). bf16 MXU, f32 out."""
    kh, kw, cin, cout = w.shape
    n = x.shape[0]

    if kh == 1 and kw == 1 and padding == 0:
        # 1x1 conv: no im2col; strided 1x1 == spatial subsample + matmul.
        if stride > 1:
            x = x[:, ::stride, ::stride, :]
        _, oh, ow, _ = x.shape
        a = x.reshape(n * oh * ow, cin)
        b = w.reshape(cin, cout)
        return _matmul(a, b).reshape(n, oh, ow, cout)

    # KxK conv: im2col with taps concatenated onto the K axis (tap-major,
    # channel-minor) which matches w.reshape(kh*kw*cin, cout) row order.
    taps, oh, ow = _extract_patches(x, kh, kw, stride, dilation, padding)
    a = jnp.concatenate(taps, axis=-1).reshape(n * oh * ow, kh * kw * cin)
    b = w.reshape(kh * kw * cin, cout)
    return _matmul(a, b).reshape(n, oh, ow, cout)


# ---------------------------- batchnorm wrappers ------------------------------

def _bn_scale_shift(x2, gamma, beta, m_true, Mp, TBM, C):
    # Pass 1: tiled per-channel sum / sumsq accumulation.
    s, sq = pl.pallas_call(
        _bn_stats_kernel,
        out_shape=(jax.ShapeDtypeStruct((1, C), jnp.float32),
                   jax.ShapeDtypeStruct((1, C), jnp.float32)),
        grid_spec=pltpu.PrefetchScalarGridSpec(
            num_scalar_prefetch=0,
            grid=(Mp // TBM,),
            in_specs=[pl.BlockSpec((TBM, C), lambda i: (i, 0))],
            out_specs=[pl.BlockSpec((1, C), lambda i: (0, 0)),
                       pl.BlockSpec((1, C), lambda i: (0, 0))]),
        compiler_params=pltpu.CompilerParams(
            dimension_semantics=("arbitrary",),
            vmem_limit_bytes=VMEM_LIMIT),
    )(x2)
    # Zero-padded rows contribute nothing; divide by the true row count.
    mean = s / m_true
    var = jnp.maximum(sq / m_true - mean * mean, 0.0)  # guard cancellation
    scale = gamma * jax.lax.rsqrt(var + 1e-5)
    shift = beta - mean * scale
    return scale, shift


@functools.partial(jax.jit, static_argnames=("relu",))
def batchnorm2d(x, gamma, beta, *, relu):
    # TODO(synk): training-mode batch statistics (module default after
    # construction); eval-mode running stats would require stateful buffers.
    N, H, W, C = x.shape
    M = N * H * W
    Mp = _round_up(M, 128)
    x2 = x.reshape(M, C)
    if Mp != M:
        x2 = jnp.pad(x2, ((0, Mp - M), (0, 0)))
    TBM = _pick_m_tile(Mp, C * 4)

    scale, shift = _bn_scale_shift(x2, gamma, beta, M, Mp, TBM, C)

    y = pl.pallas_call(
        functools.partial(_affine_kernel, relu=relu),
        out_shape=jax.ShapeDtypeStruct((Mp, C), jnp.float32),
        grid_spec=pltpu.PrefetchScalarGridSpec(
            num_scalar_prefetch=0,
            grid=(Mp // TBM,),
            in_specs=[pl.BlockSpec((TBM, C), lambda i: (i, 0)),
                      pl.BlockSpec((1, C), lambda i: (0, 0)),
                      pl.BlockSpec((1, C), lambda i: (0, 0))],
            out_specs=pl.BlockSpec((TBM, C), lambda i: (i, 0))),
        compiler_params=pltpu.CompilerParams(
            dimension_semantics=("parallel",),
            vmem_limit_bytes=VMEM_LIMIT),
    )(x2, scale, shift)
    return y[:M].reshape(N, H, W, C)


@jax.jit
def batchnorm2d_add_relu(x, res, gamma, beta):
    N, H, W, C = x.shape
    M = N * H * W
    Mp = _round_up(M, 128)
    x2 = x.reshape(M, C)
    r2 = res.reshape(M, C)
    if Mp != M:
        x2 = jnp.pad(x2, ((0, Mp - M), (0, 0)))
        r2 = jnp.pad(r2, ((0, Mp - M), (0, 0)))
    TBM = _pick_m_tile(Mp, C * 4)

    scale, shift = _bn_scale_shift(x2, gamma, beta, M, Mp, TBM, C)

    y = pl.pallas_call(
        _affine_add_relu_kernel,
        out_shape=jax.ShapeDtypeStruct((Mp, C), jnp.float32),
        grid_spec=pltpu.PrefetchScalarGridSpec(
            num_scalar_prefetch=0,
            grid=(Mp // TBM,),
            in_specs=[pl.BlockSpec((TBM, C), lambda i: (i, 0)),
                      pl.BlockSpec((TBM, C), lambda i: (i, 0)),
                      pl.BlockSpec((1, C), lambda i: (0, 0)),
                      pl.BlockSpec((1, C), lambda i: (0, 0))],
            out_specs=pl.BlockSpec((TBM, C), lambda i: (i, 0))),
        compiler_params=pltpu.CompilerParams(
            dimension_semantics=("parallel",),
            vmem_limit_bytes=VMEM_LIMIT),
    )(x2, r2, scale, shift)
    return y[:M].reshape(N, H, W, C)


# ------------------------------ maxpool wrapper -------------------------------

@jax.jit
def maxpool_3x3_s2(x):
    N, H, W, C = x.shape
    taps, oh, ow = _extract_patches(x, 3, 3, 2, 1, 1, pad_value=-jnp.inf)
    M = N * oh * ow
    Mp = _round_up(M, 128)
    t2 = jnp.stack(taps, axis=0).reshape(9, M, C)
    if Mp != M:
        t2 = jnp.pad(t2, ((0, 0), (0, Mp - M), (0, 0)))
    TBM = _pick_m_tile(Mp, 9 * C * 4)

    y = pl.pallas_call(
        _maxpool_kernel,
        out_shape=jax.ShapeDtypeStruct((Mp, C), jnp.float32),
        grid_spec=pltpu.PrefetchScalarGridSpec(
            num_scalar_prefetch=0,
            grid=(Mp // TBM,),
            in_specs=[pl.BlockSpec((9, TBM, C), lambda i: (0, i, 0))],
            out_specs=pl.BlockSpec((TBM, C), lambda i: (i, 0))),
        compiler_params=pltpu.CompilerParams(
            dimension_semantics=("parallel",),
            vmem_limit_bytes=VMEM_LIMIT),
    )(t2)
    return y[:M].reshape(N, oh, ow, C)


# --------------------------- parameter synthesis ------------------------------

class _ParamGen:
    def __init__(self, seed=0):
        self._key = jax.random.PRNGKey(seed)
        self._n = 0

    def conv(self, kh, kw, cin, cout):
        # nn.init.kaiming_normal_(w, mode='fan_out', nonlinearity='relu')
        self._n += 1
        k = jax.random.fold_in(self._key, self._n)
        std = (2.0 / (cout * kh * kw)) ** 0.5
        return jax.random.normal(k, (kh, kw, cin, cout), jnp.float32) * std

    def bn(self, c):
        # nn.init.constant_(weight, 1); nn.init.constant_(bias, 0)
        return jnp.ones((1, c), jnp.float32), jnp.zeros((1, c), jnp.float32)


def _make_bottleneck(pg, inplanes, planes, stride, dilation, downsample):
    p = dict(stride=stride, dilation=dilation)
    p['conv1_w'] = pg.conv(1, 1, inplanes, planes)
    p['bn1_g'], p['bn1_b'] = pg.bn(planes)
    p['conv2_w'] = pg.conv(3, 3, planes, planes)
    p['bn2_g'], p['bn2_b'] = pg.bn(planes)
    p['conv3_w'] = pg.conv(1, 1, planes, planes * 4)
    p['bn3_g'], p['bn3_b'] = pg.bn(planes * 4)
    if downsample:
        p['ds_w'] = pg.conv(1, 1, inplanes, planes * 4)
        p['ds_bn_g'], p['ds_bn_b'] = pg.bn(planes * 4)
    return p


def init_res101_encoder_params(seed=0,
                               replace_stride_with_dilation=(True, True, False)):
    # TODO(synk): torch.load of pretrained .pth has no Pallas equivalent; weights
    # are synthesized deterministically with the module's _init_weights scheme.
    pg = _ParamGen(seed)
    params = {'conv1_w': pg.conv(7, 7, 3, 64)}
    params['bn1_g'], params['bn1_b'] = pg.bn(64)

    layers_cfg = [(64, 3, 1), (128, 4, 2), (256, 23, 2), (512, 3, 2)]  # resnet101
    inplanes, dilation = 64, 1
    for li, (planes, blocks, stride) in enumerate(layers_cfg):
        dilate = False if li == 0 else replace_stride_with_dilation[li - 1]
        previous_dilation = dilation
        if dilate:
            dilation *= stride
            stride = 1
        needs_ds = (stride != 1) or (inplanes != planes * 4)
        blocks_p = [_make_bottleneck(pg, inplanes, planes, stride,
                                     previous_dilation, needs_ds)]
        inplanes = planes * 4
        for _ in range(1, blocks):
            blocks_p.append(_make_bottleneck(pg, inplanes, planes, 1, dilation,
                                             False))
        params[f'layer{li + 1}'] = blocks_p

    params['reduce1_w'] = pg.conv(1, 1, 1024 + 512, 512)
    params['reduce2_w'] = pg.conv(1, 1, 2048, 512)
    return params


# --------------------------------- forward ------------------------------------

def _bottleneck_forward(x, p):
    out = conv2d(x, p['conv1_w'], stride=1, dilation=1, padding=0)
    out = batchnorm2d(out, p['bn1_g'], p['bn1_b'], relu=True)
    out = conv2d(out, p['conv2_w'], stride=p['stride'], dilation=p['dilation'],
                 padding=p['dilation'])
    out = batchnorm2d(out, p['bn2_g'], p['bn2_b'], relu=True)
    out = conv2d(out, p['conv3_w'], stride=1, dilation=1, padding=0)
    if 'ds_w' in p:
        identity = conv2d(x, p['ds_w'], stride=p['stride'], dilation=1, padding=0)
        identity = batchnorm2d(identity, p['ds_bn_g'], p['ds_bn_b'], relu=False)
    else:
        identity = x
    return batchnorm2d_add_relu(out, identity, p['bn3_g'], p['bn3_b'])


def res101_encoder_forward(x_nchw, params):
    # TODO(synk): reference forward does `features = []` then dict-style
    # assignment (a bug in the original); we return the intended dict.
    x = jnp.transpose(x_nchw, (0, 2, 3, 1)).astype(jnp.float32)  # NCHW -> NHWC

    # stem
    x = conv2d(x, params['conv1_w'], stride=2, dilation=1, padding=3)
    x = batchnorm2d(x, params['bn1_g'], params['bn1_b'], relu=True)
    x = maxpool_3x3_s2(x)

    x1 = x
    for p in params['layer1']:
        x1 = _bottleneck_forward(x1, p)
    x2 = x1
    for p in params['layer2']:
        x2 = _bottleneck_forward(x2, p)
    x3 = x2
    for p in params['layer3']:
        x3 = _bottleneck_forward(x3, p)
    x4 = x3
    for p in params['layer4']:
        x4 = _bottleneck_forward(x4, p)

    # reduce1 on the (x2, x3) concat without materializing the 1536-ch concat:
    # split the weight along Cin and sum the two partial 1x1 convs.
    c2 = x2.shape[-1]
    w_a = params['reduce1_w'][:, :, :c2, :]
    w_b = params['reduce1_w'][:, :, c2:, :]
    down1 = conv2d(x2, w_a) + conv2d(x3, w_b)
    down2 = conv2d(x4, params['reduce2_w'])
    return {
        'down1': jnp.transpose(down1, (0, 3, 1, 2)),  # back to NCHW
        'down2': jnp.transpose(down2, (0, 3, 1, 2)),
    }


# ----------------------------------- main --------------------------------------

if __name__ == "__main__":
    # small but architecture-consistent input: NCHW, 3 channels, 64x64 spatial
    x = jax.random.normal(jax.random.PRNGKey(0), (2, 3, 64, 64), jnp.float32)
    params = init_res101_encoder_params(seed=0)
    feats = res101_encoder_forward(x, params)
    jax.block_until_ready(feats)
    assert feats['down1'].shape == (2, 512, 16, 16), feats['down1'].shape
    assert feats['down2'].shape == (2, 512, 8, 8), feats['down2'].shape
    print("KERNEL_OK")
</pallas_src>

<mosaic_0001>
module attributes {stable_mosaic.version = 11 : i64} {
  func.func @_matmul_kernel(%arg0: i32, %arg1: i32, %arg2: i32, %arg3: memref<512x256xbf16, #tpu.memory_space<vmem>>, %arg4: memref<256x128xbf16, #tpu.memory_space<vmem>>, %arg5: memref<512x128xf32, #tpu.memory_space<vmem>>, %arg6: memref<512x128xf32, #tpu.memory_space<vmem>>) attributes {dimension_semantics = [#tpu.dimension_semantics<parallel>, #tpu.dimension_semantics<parallel>, #tpu.dimension_semantics<arbitrary>], iteration_bounds = array<i64: 4, 1, 1>, scalar_prefetch = 0 : i64, scratch_operands = 1 : i64, tpu.core_type = #tpu.core_type<tc>, window_params = [{transform_indices = @transform_0, window_bounds = array<i64: 512, 256>}, {transform_indices = @transform_1, window_bounds = array<i64: 256, 128>}, {transform_indices = @transform_2, window_bounds = array<i64: 512, 128>}]} {
    %c0_i32 = arith.constant 0 : i32
    %0 = arith.cmpi eq, %arg2, %c0_i32 : i32
    %1 = arith.extui %0 : i1 to i32
    %c0_i32_0 = arith.constant 0 : i32
    %2 = arith.cmpi ne, %1, %c0_i32_0 : i32
    scf.if %2 {
      %cst_10 = arith.constant 0.000000e+00 : f32
      %12 = vector.broadcast %cst_10 : f32 to vector<512x128xf32>
      %c0_11 = arith.constant 0 : index
      %c0_12 = arith.constant 0 : index
      %13 = vector.load %arg6[%c0_11, %c0_12] : memref<512x128xf32, #tpu.memory_space<vmem>>, vector<512x128xf32>
      tpu.vector_store %arg6[%c0_11, %c0_12], %12 {strides = array<i32>} : memref<512x128xf32, #tpu.memory_space<vmem>>, vector<512x128xf32>,
    } else {
    }
    %c0 = arith.constant 0 : index
    %c0_1 = arith.constant 0 : index
    %3 = vector.load %arg6[%c0, %c0_1] : memref<512x128xf32, #tpu.memory_space<vmem>>, vector<512x128xf32>
    %c0_2 = arith.constant 0 : index
    %c0_3 = arith.constant 0 : index
    %4 = vector.load %arg3[%c0_2, %c0_3] : memref<512x256xbf16, #tpu.memory_space<vmem>>, vector<512x256xbf16>
    %c0_4 = arith.constant 0 : index
    %c0_5 = arith.constant 0 : index
    %5 = vector.load %arg4[%c0_4, %c0_5] : memref<256x128xbf16, #tpu.memory_space<vmem>>, vector<256x128xbf16>
    %cst = arith.constant dense<0.000000e+00> : vector<512x128xf32>
    %6 = tpu.matmul %4, %5, %cst {dimension_numbers = #tpu.dot_dimension_numbers<[1], [0], [0], [1], [0, 0, 1, 1], [], []>} : vector<512x256xbf16>, vector<256x128xbf16>, vector<512x128xf32> -> vector<512x128xf32>
    %7 = arith.addf %3, %6 : vector<512x128xf32>
    %c0_6 = arith.constant 0 : index
    %c0_7 = arith.constant 0 : index
    %8 = vector.load %arg6[%c0_6, %c0_7] : memref<512x128xf32, #tpu.memory_space<vmem>>, vector<512x128xf32>
    tpu.vector_store %arg6[%c0_6, %c0_7], %7 {strides = array<i32>} : memref<512x128xf32, #tpu.memory_space<vmem>>, vector<512x128xf32>,
    %c0_i32_8 = arith.constant 0 : i32
    %9 = arith.cmpi eq, %arg2, %c0_i32_8 : i32
    %10 = arith.extui %9 : i1 to i32
    %c0_i32_9 = arith.constant 0 : i32
    %11 = arith.cmpi ne, %10, %c0_i32_9 : i32
    scf.if %11 {
      %c0_10 = arith.constant 0 : index
      %c0_11 = arith.constant 0 : index
      %12 = vector.load %arg6[%c0_10, %c0_11] : memref<512x128xf32, #tpu.memory_space<vmem>>, vector<512x128xf32>
      %c0_12 = arith.constant 0 : index
      %c0_13 = arith.constant 0 : index
      %13 = vector.load %arg5[%c0_12, %c0_13] : memref<512x128xf32, #tpu.memory_space<vmem>>, vector<512x128xf32>
      tpu.vector_store %arg5[%c0_12, %c0_13], %12 {strides = array<i32>} : memref<512x128xf32, #tpu.memory_space<vmem>>, vector<512x128xf32>,
    } else {
    }
    return
  }
  func.func @transform_0(%arg0: i32, %arg1: i32, %arg2: i32) -> (i32, i32) {
    %c0_i32 = arith.constant 0 : i32
    return %arg0, %arg2 : i32, i32
  }
  func.func @transform_1(%arg0: i32, %arg1: i32, %arg2: i32) -> (i32, i32) {
    %c0_i32 = arith.constant 0 : i32
    return %arg2, %arg1 : i32, i32
  }
  func.func @transform_2(%arg0: i32, %arg1: i32, %arg2: i32) -> (i32, i32) {
    %c0_i32 = arith.constant 0 : i32
    return %arg0, %arg1 : i32, i32
  }
}

</mosaic_0001>

<bundles_post_ra>
// kernel: conv2d.1
= control target key start
LH: loop header
LB: loop body
LE: loop exit
PB: predicated region body
PF: predicated region fallthrough
CT: control target
= control target key end

     0   :  { %7 = vsyncpa [#allocation4], 0  ;;  %s2254_s0 = inlined_call_operand.vmem [shape: bf16[2048,256], index: 0, kind: input, shape index: {}]   ;;  %s2255_s1 = inlined_call_operand.vmem [shape: bf16[256,128], index: 1, kind: input, shape index: {}]   ;;  %s2256_s2 = inlined_call_operand.hbm [shape: f32[2048,128], index: 2, kind: output, shape index: {}]  }
   0x1   :  { %9 = vsyncpa [#allocation4 + $0x1], 0  ;;  %s1923_s9 = smov 0   ;;  %s1925_s10 = smov 0  }
   0x2   :  { %s1927_s11 = smov 0   ;;  %s1929_s12 = smov 0  }
   0x3   :  { %s1931_s13 = smov 0   ;;  %s1933_s14 = smov 0  }
   0x4 LB: > { %s1525_s15 = sadd.s32 4294967295, %s1902_s14   ;;  %s1526_s16 = sadd.s32 4294967294, %s1902_s14   ;;  %s1902_s14 = sphi %s1933_s14, %s15_s14   ;;  %s1898_s13 = sphi %s1931_s13, %s2263_s13   ;;  %s1894_s12 = sphi %s1929_s12, %s2262_s12   ;;  %s1890_s11 = sphi %s1927_s11, %s2261_s11   ;;  %s1886_s10 = sphi %s1925_s10, %s2260_s10   ;;  %s1882_s9 = sphi %s1923_s9, %s2259_s9  }
   0x5   : > { %s34_s17 = sadd.s32 1, %s1898_s13  ;;  %s99_s18 = sadd.s32 1, %s1890_s11 }
   0x6   : > { %p36_p0 = scmp.ge.s32.totalorder %s34_s17, 4  ;;  %p109_p1 = scmp.ne.s32.totalorder %s1890_s11, %s1886_s10 }
   0x7   : > { %p110_p2 = scmp.eq.s32.totalorder %s1525_s15, 3  ;;  %p115_p3 = scmp.ne.s32.totalorder %s1886_s10, %s1882_s9 }
   0x8   : > { %s2265_s17 = smov (%p36_p0, %s34_s17), 0  ;;  %p116_p5 = scmp.eq.s32.totalorder %s1526_s16, 3 }
   0x9   : > { %p1963_p4 = por %p110_p2, %p109_p1  ;;  %s94_s20 = ssub.s32 %s1898_s13, %s2265_s17 }
   0xa   : > { %p1530_p6 = scmp.ge.s32.totalorder %s1902_s14, 1  ;;  %p97_p7 = scmp.eq.s32.totalorder %s94_s20, 0 }
   0xb   : > { %p1970_p8 = por %p116_p5, %p115_p3  ;;  %p161_p9 = scmp.lt.s32.totalorder %s1902_s14, 5 }
   0xc   : > { %s1976_s22 = scalar_select %p97_p7, %s1890_s11, %s99_s18  }
   0xd   : > { %p162_p10 = pnand %p1530_p6, %p161_p9 }
   0xe   : > { %v1712_v0 = vld [vmem:[%s2255_s1] sm:$0xff] (!%p162_p10)   ;;  %v1904_v1 = vmov (!%p162_p10), 0   ;;  %s1532_s25 = sshll.u32 (!%p162_p10), %s1894_s12, 6  ;;  %v1713_v2 = vld [vmem:[%s2255_s1 + $0x8] sm:$0xff] (!%p162_p10)   ;;  %v1714_v3 = vld [vmem:[%s2255_s1 + $0x10] sm:$0xff] (!%p162_p10)   ;;  %s1905_s5 = smov (!%p162_p10), [#allocation3]  }
   0xf   : > { %165 = sbr.rel (%p162_p10) target bundleno = 428 (0x1ac), region = 28  ;;  %863 = vmatprep.subr.bf16.mxu0 (!%p162_p10), %v1904_v1  ;;  %1622 = vmatprep.subr.bf16.mxu1 (!%p162_p10), %v1904_v1  ;;  %p198_p11 = scmp.lt.s32.totalorder (!%p162_p10), %s1532_s25, 255  ;;  %v1715_v4 = vld [vmem:[%s2255_s1 + $0x18] sm:$0xff] (!%p162_p10)   ;;  %v1716_v5 = vld [vmem:[%s2255_s1 + $0x20] sm:$0xff] (!%p162_p10)   ;;  %v1717_v7 = vld [vmem:[%s2255_s1 + $0x28] sm:$0xff] (!%p162_p10)  }
  0x10   : > { %864 = vmatpush1.bf16.msra.mxu0 (!%p162_p10), %v1712_v0  ;;  %1638 = vmatpush1.bf16.msra.mxu1 (!%p162_p10), %v1712_v0  ;;  %v1718_v9 = vld [vmem:[%s2255_s1 + $0x30] sm:$0xff] (!%p162_p10)   ;;  %v1719_v10 = vld [vmem:[%s2255_s1 + $0x38] sm:$0xff] (!%p162_p10)   ;;  %v1720_v11 = vld [vmem:[%s2255_s1 + $0x40] sm:$0xff] (!%p162_p10)   ;;  %s1828_s6 = sshll.u32 (!%p162_p10), %s1905_s5, 4  ;;  %s1829_s6 = int_to_ptr.vmem [resolvable:$false] %s1828_s6 }
  0x11   : > { %865 = vmatprep.subr.bf16.mxu0 (!%p162_p10), %v1904_v1  ;;  %1623 = vmatprep.subr.bf16.mxu1 (!%p162_p10), %v1904_v1  ;;  %v1721_v12 = vld [vmem:[%s2255_s1 + $0x48] sm:$0xff] (!%p162_p10)   ;;  %v1722_v13 = vld [vmem:[%s2255_s1 + $0x50] sm:$0xff] (!%p162_p10)   ;;  %v1723_v14 = vld [vmem:[%s2255_s1 + $0x58] sm:$0xff] (!%p162_p10)   ;;  %s1830_s7 = scalar_lea.vmem (!%p162_p10), %s1829_s6, 16384 }
  0x12   : > { %v1724_v15 = vld [vmem:[%s2255_s1 + $0x60] sm:$0xff] (!%p162_p10)   ;;  %v1725_v16 = vld [vmem:[%s2255_s1 + $0x68] sm:$0xff] (!%p162_p10)   ;;  %v1726_v17 = vld [vmem:[%s2255_s1 + $0x70] sm:$0xff] (!%p162_p10)  }
  0x13   : > { %v1727_v18 = vld [vmem:[%s2255_s1 + $0x78] sm:$0xff] (!%p162_p10)  }
  0x14   : > { %866 = vmatpush1.bf16.msra.mxu0 (!%p162_p10), %v1713_v2  ;;  %1639 = vmatpush1.bf16.msra.mxu1 (!%p162_p10), %v1713_v2 }
  0x15   : > { %867 = vmatprep.subr.bf16.mxu0 (!%p162_p10), %v1904_v1  ;;  %1624 = vmatprep.subr.bf16.mxu1 (!%p162_p10), %v1904_v1 }
  0x16   : > { %s2267_s25 = smov (!%p198_p11, %s1532_s25), 255 }
  0x17   : > { %s1620_s4 = sshll.u32 %s2267_s25, 3  ;;  %s193_s25 = sand.u32 1, %s1886_s10  }
  0x18   : > { %868 = vmatpush1.bf16.msra.mxu0 %v1714_v3  ;;  %1640 = vmatpush1.bf16.msra.mxu1 %v1714_v3  ;;  %s2005_s15 = scalar_lea.vmem %s2254_s0, %s1620_s4  ;;  %s1531_s26 = sshll.u32 %s193_s25, 9 }
  0x19   : > { %869 = vmatprep.subr.bf16.mxu0 %v1904_v1  ;;  %1625 = vmatprep.subr.bf16.mxu1 %v1904_v1  ;;  %v1730_v6 = vld [vmem:[%s2005_s15 + $0x4] ss:$8 sps:$4 sm:$0xff]   ;;  %v1728_v19 = vld [vmem:[%s2005_s15] ss:$8 sps:$4 sm:$0xff]   ;;  %v1734_v21 = vld [vmem:[%s2005_s15 + $0x14] ss:$8 sps:$4 sm:$0xff]  }
  0x1a   : > { %v1733_v8 = vld [vmem:[%s2005_s15 + $0x104] ss:$8 sps:$4 sm:$0xff]   ;;  %895 = vmatprep.mubr.bf16.mxu0 %v1730_v6  ;;  %v1731_v20 = vld [vmem:[%s2005_s15 + $0x100] ss:$8 sps:$4 sm:$0xff]   ;;  %v1736_v22 = vld [vmem:[%s2005_s15 + $0x114] ss:$8 sps:$4 sm:$0xff]  }
  0x1b   : > { %1023 = vmatprep.mubr.bf16.mxu1 %v1733_v8  ;;  %v1738_v23 = vld [vmem:[%s2005_s15 + $0x10] ss:$8 sps:$4 sm:$0xff]   ;;  %v1740_v25 = vld [vmem:[%s2005_s15 + $0x24] ss:$8 sps:$4 sm:$0xff]   ;;  %v1744_v27 = vld [vmem:[%s2005_s15 + $0x20] ss:$8 sps:$4 sm:$0xff]  }
  0x1c   : > { %870 = vmatpush1.bf16.msra.mxu0 %v1715_v4  ;;  %1641 = vmatpush1.bf16.msra.mxu1 %v1715_v4  ;;  %v1739_v24 = vld [vmem:[%s2005_s15 + $0x110] ss:$8 sps:$4 sm:$0xff]   ;;  %v1742_v26 = vld [vmem:[%s2005_s15 + $0x124] ss:$8 sps:$4 sm:$0xff]   ;;  %v1745_v28 = vld [vmem:[%s2005_s15 + $0x120] ss:$8 sps:$4 sm:$0xff]  }
  0x1d   : > { %871 = vmatprep.subr.bf16.mxu0 %v1904_v1  ;;  %1626 = vmatprep.subr.bf16.mxu1 %v1904_v1  ;;  %v1746_v29 = vld [vmem:[%s2005_s15 + $0x34] ss:$8 sps:$4 sm:$0xff]   ;;  %v1750_v31 = vld [vmem:[%s2005_s15 + $0x30] ss:$8 sps:$4 sm:$0xff]   ;;  %v1752_v33 = vld [vmem:[%s2005_s15 + $0x44] ss:$8 sps:$4 sm:$0xff]  }
  0x1e   : > { %v1748_v30 = vld [vmem:[%s2005_s15 + $0x134] ss:$8 sps:$4 sm:$0xff]   ;;  %v1751_v32 = vld [vmem:[%s2005_s15 + $0x130] ss:$8 sps:$4 sm:$0xff]   ;;  %v1754_v34 = vld [vmem:[%s2005_s15 + $0x144] ss:$8 sps:$4 sm:$0xff]  }
  0x1f   : > { %v1756_v35 = vld [vmem:[%s2005_s15 + $0x40] ss:$8 sps:$4 sm:$0xff]   ;;  %v1758_v37 = vld [vmem:[%s2005_s15 + $0x54] ss:$8 sps:$4 sm:$0xff]   ;;  %v1762_v39 = vld [vmem:[%s2005_s15 + $0x50] ss:$8 sps:$4 sm:$0xff]  }
  0x20   : > { %872 = vmatpush1.bf16.msra.mxu0 %v1716_v5  ;;  %1642 = vmatpush1.bf16.msra.mxu1 %v1716_v5  ;;  %v1757_v36 = vld [vmem:[%s2005_s15 + $0x140] ss:$8 sps:$4 sm:$0xff]   ;;  %v1760_v38 = vld [vmem:[%s2005_s15 + $0x154] ss:$8 sps:$4 sm:$0xff]   ;;  %v1763_v40 = vld [vmem:[%s2005_s15 + $0x150] ss:$8 sps:$4 sm:$0xff]  }
  0x21   : > { %873 = vmatprep.subr.bf16.mxu0 %v1904_v1  ;;  %1627 = vmatprep.subr.bf16.mxu1 %v1904_v1  ;;  %v1764_v41 = vld [vmem:[%s2005_s15 + $0x64] ss:$8 sps:$4 sm:$0xff]   ;;  %v1768_v43 = vld [vmem:[%s2005_s15 + $0x60] ss:$8 sps:$4 sm:$0xff]   ;;  %v1770_v45 = vld [vmem:[%s2005_s15 + $0x74] ss:$8 sps:$4 sm:$0xff]  }
  0x22   : > { %v1766_v42 = vld [vmem:[%s2005_s15 + $0x164] ss:$8 sps:$4 sm:$0xff]   ;;  %v1769_v44 = vld [vmem:[%s2005_s15 + $0x160] ss:$8 sps:$4 sm:$0xff]   ;;  %v1772_v46 = vld [vmem:[%s2005_s15 + $0x174] ss:$8 sps:$4 sm:$0xff]  }
  0x23   : > { %v1774_v47 = vld [vmem:[%s2005_s15 + $0x70] ss:$8 sps:$4 sm:$0xff]   ;;  %v1776_v49 = vld [vmem:[%s2005_s15 + $0x84] ss:$8 sps:$4 sm:$0xff]   ;;  %v1780_v51 = vld [vmem:[%s2005_s15 + $0x80] ss:$8 sps:$4 sm:$0xff]  }
  0x24   : > { %874 = vmatpush1.bf16.msra.mxu0 %v1717_v7  ;;  %1643 = vmatpush1.bf16.msra.mxu1 %v1717_v7  ;;  %v1775_v48 = vld [vmem:[%s2005_s15 + $0x170] ss:$8 sps:$4 sm:$0xff]   ;;  %v1778_v50 = vld [vmem:[%s2005_s15 + $0x184] ss:$8 sps:$4 sm:$0xff]   ;;  %v1781_v52 = vld [vmem:[%s2005_s15 + $0x180] ss:$8 sps:$4 sm:$0xff]  }
  0x25   : > { %875 = vmatprep.subr.bf16.mxu0 %v1904_v1  ;;  %1628 = vmatprep.subr.bf16.mxu1 %v1904_v1  ;;  %v1782_v53 = vld [vmem:[%s2005_s15 + $0x94] ss:$8 sps:$4 sm:$0xff]   ;;  %v1786_v55 = vld [vmem:[%s2005_s15 + $0x90] ss:$8 sps:$4 sm:$0xff]   ;;  %v1788_v57 = vld [vmem:[%s2005_s15 + $0xa4] ss:$8 sps:$4 sm:$0xff]  }
  0x26   : > { %v1784_v54 = vld [vmem:[%s2005_s15 + $0x194] ss:$8 sps:$4 sm:$0xff]   ;;  %v1787_v56 = vld [vmem:[%s2005_s15 + $0x190] ss:$8 sps:$4 sm:$0xff]   ;;  %v1790_v58 = vld [vmem:[%s2005_s15 + $0x1a4] ss:$8 sps:$4 sm:$0xff]  }
  0x27   : > { %v1792_v59 = vld [vmem:[%s2005_s15 + $0xa0] ss:$8 sps:$4 sm:$0xff]   ;;  %v1794_v61 = vld [vmem:[%s2005_s15 + $0xb4] ss:$8 sps:$4 sm:$0xff]   ;;  %v1798_v63 = vld [vmem:[%s2005_s15 + $0xb0] ss:$8 sps:$4 sm:$0xff]  }
  0x28   : > { %876 = vmatpush1.bf16.msra.mxu0 %v1718_v9  ;;  %1644 = vmatpush1.bf16.msra.mxu1 %v1718_v9  ;;  %v1793_v60 = vld [vmem:[%s2005_s15 + $0x1a0] ss:$8 sps:$4 sm:$0xff]   ;;  %v1796_v62 = vld [vmem:[%s2005_s15 + $0x1b4] ss:$8 sps:$4 sm:$0xff]   ;;  %v1799_v0 = vld [vmem:[%s2005_s15 + $0x1b0] ss:$8 sps:$4 sm:$0xff]  }
  0x29   : > { %877 = vmatprep.subr.bf16.mxu0 %v1904_v1  ;;  %1629 = vmatprep.subr.bf16.mxu1 %v1904_v1  ;;  %v1802_v2 = vld [vmem:[%s2005_s15 + $0x1c4] ss:$8 sps:$4 sm:$0xff]   ;;  %v1804_v3 = vld [vmem:[%s2005_s15 + $0xc0] ss:$8 sps:$4 sm:$0xff]   ;;  %v1806_v5 = vld [vmem:[%s2005_s15 + $0xd4] ss:$8 sps:$4 sm:$0xff]  }
  0x2a   : > { %v1805_v4 = vld [vmem:[%s2005_s15 + $0x1c0] ss:$8 sps:$4 sm:$0xff]   ;;  %v1808_v6 = vld [vmem:[%s2005_s15 + $0x1d4] ss:$8 sps:$4 sm:$0xff]   ;;  %v1810_v7 = vld [vmem:[%s2005_s15 + $0xd0] ss:$8 sps:$4 sm:$0xff]  }
  0x2b   : > { %v1811_v8 = vld [vmem:[%s2005_s15 + $0x1d0] ss:$8 sps:$4 sm:$0xff]   ;;  %v1812_v9 = vld [vmem:[%s2005_s15 + $0xe4] ss:$8 sps:$4 sm:$0xff]   ;;  %s2131_s27 = scalar_lea.vmem [#allocation3], %s1531_s26 }
  0x2c   : > { %878 = vmatpush1.bf16.msra.mxu0 %v1719_v10  ;;  %1645 = vmatpush1.bf16.msra.mxu1 %v1719_v10  ;;  %v1814_v10 = vld [vmem:[%s2005_s15 + $0x1e4] ss:$8 sps:$4 sm:$0xff]   ;;  %s1426_s28 = sshll.u32 %s2131_s27, 4  ;;  %s2200_s28 = int_to_ptr.vmem [resolvable:$true] %s1426_s28 }
  0x2d   : > { %879 = vmatprep.subr.bf16.mxu0 %v1904_v1  ;;  %1630 = vmatprep.subr.bf16.mxu1 %v1904_v1  ;;  %s1824_s4 = scalar_lea.vmem %s2200_s28, 8192  ;;  %p1831_p1 = scmp.lt.s32.totalorder %s2200_s28, %s1829_s6 }
  0x2e   : > { %p1825_p12 = scmp.ne.s32.totalorder %s2200_s28, %s1824_s4  ;;  %p1832_p2 = scmp.lt.s32.totalorder %s1830_s7, %s1824_s4 }
  0x30   : > { %880 = vmatpush1.bf16.msra.mxu0 %v1720_v11  ;;  %1646 = vmatpush1.bf16.msra.mxu1 %v1720_v11  ;;  %v1816_v11 = vld [vmem:[%s2005_s15 + $0xe0] ss:$8 sps:$4 sm:$0xff]   ;;  %p1826_p13 = pnand %p1825_p12, %p1963_p4  ;;  %p1833_p3 = por %p1832_p2, %p1831_p1 }
  0x31   : > { %881 = vmatprep.subr.bf16.mxu0 %v1904_v1  ;;  %1631 = vmatprep.subr.bf16.mxu1 %v1904_v1 }
  0x32   : > { %p1827_p0 = pneg %p1826_p13 }
  0x34   : > { %882 = vmatpush1.bf16.msra.mxu0 %v1721_v12  ;;  %1647 = vmatpush1.bf16.msra.mxu1 %v1721_v12  ;;  %v1817_v12 = vld [vmem:[%s2005_s15 + $0x1e0] ss:$8 sps:$4 sm:$0xff]   ;;  %p1834_p5 = pnand %p1833_p3, %p1827_p0 }
  0x35   : > { %883 = vmatprep.subr.bf16.mxu0 %v1904_v1  ;;  %1632 = vmatprep.subr.bf16.mxu1 %v1904_v1 }
  0x38   : > { %884 = vmatpush1.bf16.msra.mxu0 %v1722_v13  ;;  %1648 = vmatpush1.bf16.msra.mxu1 %v1722_v13  ;;  %v1818_v13 = vld [vmem:[%s2005_s15 + $0xf4] ss:$8 sps:$4 sm:$0xff]  }
  0x39   : > { %885 = vmatprep.subr.bf16.mxu0 %v1904_v1  ;;  %1633 = vmatprep.subr.bf16.mxu1 %v1904_v1 }
  0x3c   : > { %886 = vmatpush1.bf16.msra.mxu0 %v1723_v14  ;;  %1649 = vmatpush1.bf16.msra.mxu1 %v1723_v14  ;;  %v1820_v14 = vld [vmem:[%s2005_s15 + $0x1f4] ss:$8 sps:$4 sm:$0xff]  }
  0x3d   : > { %887 = vmatprep.subr.bf16.mxu0 %v1904_v1  ;;  %1634 = vmatprep.subr.bf16.mxu1 %v1904_v1 }
  0x40   : > { %888 = vmatpush1.bf16.msra.mxu0 %v1724_v15  ;;  %1650 = vmatpush1.bf16.msra.mxu1 %v1724_v15  ;;  %v1822_v15 = vld [vmem:[%s2005_s15 + $0xf0] ss:$8 sps:$4 sm:$0xff]  }
  0x41   : > { %889 = vmatprep.subr.bf16.mxu0 %v1904_v1  ;;  %1635 = vmatprep.subr.bf16.mxu1 %v1904_v1 }
  0x44   : > { %890 = vmatpush1.bf16.msra.mxu0 %v1725_v16  ;;  %1651 = vmatpush1.bf16.msra.mxu1 %v1725_v16  ;;  %v1823_v16 = vld [vmem:[%s2005_s15 + $0x1f0] ss:$8 sps:$4 sm:$0xff]  }
  0x45   : > { %891 = vmatprep.subr.bf16.mxu0 %v1904_v1  ;;  %1636 = vmatprep.subr.bf16.mxu1 %v1904_v1 }
  0x48   : > { %892 = vmatpush1.bf16.msra.mxu0 %v1726_v17  ;;  %1652 = vmatpush1.bf16.msra.mxu1 %v1726_v17 }
  0x49   : > { %893 = vmatprep.subr.bf16.mxu0 %v1904_v1  ;;  %1637 = vmatprep.subr.bf16.mxu1 %v1904_v1  ;;  %v1800_v1 = vld [vmem:[%s2005_s15 + $0xc4] ss:$8 sps:$4 sm:$0xff]   ;;  %s1621_s15 = sshll.u32 %s1894_s12, 13  ;;  %s2208_s12 = scalar_lea.sflag [#allocation4], %s193_s25 }
  0x4a   : > { %s2198_s3 = scalar_lea.hbm %s2256_s2, %s1621_s15 }
  0x4c   : > { %894 = vmatpush1.bf16.msra.mxu0 %v1727_v18  ;;  %1653 = vmatpush1.bf16.msra.mxu1 %v1727_v18 }
  0x4f   : > { %896 = vmatmul.mubr.bf16.vlgmr.msra.gmra.mrb[0].mxu0 %v1728_v19  ;;  %1024 = vmatmul.mubr.bf16.vlgmr.msra.gmra.mrb[0].mxu1 %v1731_v20 }
  0x50   : > { %903 = vmatprep.mubr.bf16.mxu0 %v1734_v21  ;;  %1031 = vmatprep.mubr.bf16.mxu1 %v1736_v22 }
  0x57   : > { %904 = vmatmul.mubr.bf16.gmra.mrb[4].mxu0 %v1738_v23  ;;  %1032 = vmatmul.mubr.bf16.gmra.mrb[4].mxu1 %v1739_v24 }
  0x58   : > { %911 = vmatprep.mubr.bf16.mxu0 %v1740_v25  ;;  %1039 = vmatprep.mubr.bf16.mxu1 %v1742_v26 }
  0x5f   : > { %912 = vmatmul.mubr.bf16.gmra.mrb[8].mxu0 %v1744_v27  ;;  %1040 = vmatmul.mubr.bf16.gmra.mrb[8].mxu1 %v1745_v28 }
  0x60   : > { %919 = vmatprep.mubr.bf16.mxu0 %v1746_v29  ;;  %1047 = vmatprep.mubr.bf16.mxu1 %v1748_v30 }
  0x67   : > { %920 = vmatmul.mubr.bf16.gmra.mrb[12].mxu0 %v1750_v31  ;;  %1048 = vmatmul.mubr.bf16.gmra.mrb[12].mxu1 %v1751_v32 }
  0x68   : > { %927 = vmatprep.mubr.bf16.mxu0 %v1752_v33  ;;  %1055 = vmatprep.mubr.bf16.mxu1 %v1754_v34 }
  0x6f   : > { %928 = vmatmul.mubr.bf16.gmra.mrb[16].mxu0 %v1756_v35  ;;  %1056 = vmatmul.mubr.bf16.gmra.mrb[16].mxu1 %v1757_v36 }
  0x70   : > { %935 = vmatprep.mubr.bf16.mxu0 %v1758_v37  ;;  %1063 = vmatprep.mubr.bf16.mxu1 %v1760_v38 }
  0x77   : > { %936 = vmatmul.mubr.bf16.gmra.mrb[20].mxu0 %v1762_v39  ;;  %1064 = vmatmul.mubr.bf16.gmra.mrb[20].mxu1 %v1763_v40 }
  0x78   : > { %943 = vmatprep.mubr.bf16.mxu0 %v1764_v41  ;;  %1071 = vmatprep.mubr.bf16.mxu1 %v1766_v42 }
  0x7f   : > { %944 = vmatmul.mubr.bf16.gmra.mrb[24].mxu0 %v1768_v43  ;;  %1072 = vmatmul.mubr.bf16.gmra.mrb[24].mxu1 %v1769_v44 }
  0x80   : > { %951 = vmatprep.mubr.bf16.mxu0 %v1770_v45  ;;  %1079 = vmatprep.mubr.bf16.mxu1 %v1772_v46 }
  0x87   : > { %952 = vmatmul.mubr.bf16.gmra.mrb[28].mxu0 %v1774_v47  ;;  %1080 = vmatmul.mubr.bf16.gmra.mrb[28].mxu1 %v1775_v48 }
  0x88   : > { %959 = vmatprep.mubr.bf16.mxu0 %v1776_v49  ;;  %1087 = vmatprep.mubr.bf16.mxu1 %v1778_v50 }
  0x8f   : > { %960 = vmatmul.mubr.bf16.gmra.mrb[32].mxu0 %v1780_v51  ;;  %1088 = vmatmul.mubr.bf16.gmra.mrb[32].mxu1 %v1781_v52 }
  0x90   : > { %967 = vmatprep.mubr.bf16.mxu0 %v1782_v53  ;;  %1095 = vmatprep.mubr.bf16.mxu1 %v1784_v54 }
  0x97   : > { %968 = vmatmul.mubr.bf16.gmra.mrb[36].mxu0 %v1786_v55  ;;  %1096 = vmatmul.mubr.bf16.gmra.mrb[36].mxu1 %v1787_v56 }
  0x98   : > { %975 = vmatprep.mubr.bf16.mxu0 %v1788_v57  ;;  %1103 = vmatprep.mubr.bf16.mxu1 %v1790_v58 }
  0x9f   : > { %976 = vmatmul.mubr.bf16.gmra.mrb[40].mxu0 %v1792_v59  ;;  %1104 = vmatmul.mubr.bf16.gmra.mrb[40].mxu1 %v1793_v60 }
  0xa0   : > { %983 = vmatprep.mubr.bf16.mxu0 %v1794_v61  ;;  %1111 = vmatprep.mubr.bf16.mxu1 %v1796_v62 }
  0xa7   : > { %984 = vmatmul.mubr.bf16.gmra.mrb[44].mxu0 %v1798_v63  ;;  %1112 = vmatmul.mubr.bf16.gmra.mrb[44].mxu1 %v1799_v0 }
  0xa8   : > { %991 = vmatprep.mubr.bf16.mxu0 %v1800_v1  ;;  %1119 = vmatprep.mubr.bf16.mxu1 %v1802_v2 }
  0xaf   : > { %992 = vmatmul.mubr.bf16.gmra.mrb[48].mxu0 %v1804_v3  ;;  %1120 = vmatmul.mubr.bf16.gmra.mrb[48].mxu1 %v1805_v4 }
  0xb0   : > { %999 = vmatprep.mubr.bf16.mxu0 %v1806_v5  ;;  %1127 = vmatprep.mubr.bf16.mxu1 %v1808_v6 }
  0xb7   : > { %1000 = vmatmul.mubr.bf16.gmra.mrb[52].mxu0 %v1810_v7  ;;  %1128 = vmatmul.mubr.bf16.gmra.mrb[52].mxu1 %v1811_v8 }
  0xb8   : > { %1007 = vmatprep.mubr.bf16.mxu0 %v1812_v9  ;;  %1135 = vmatprep.mubr.bf16.mxu1 %v1814_v10 }
  0xbf   : > { %1008 = vmatmul.mubr.bf16.gmra.mrb[56].mxu0 %v1816_v11  ;;  %1136 = vmatmul.mubr.bf16.gmra.mrb[56].mxu1 %v1817_v12 }
  0xc0   : > { %1015 = vmatprep.mubr.bf16.mxu0 %v1818_v13  ;;  %1143 = vmatprep.mubr.bf16.mxu1 %v1820_v14 }
  0xc7   : > { %1016 = vmatmul.mubr.bf16.gmra.mrb[60].mxu0 %v1822_v15  ;;  %1144 = vmatmul.mubr.bf16.gmra.mrb[60].mxu1 %v1823_v16 }
 0x122   : > { %v897_v17 = vpop.f32.mrb[0].mxu0  ;;  %v1025_v18 = vpop.f32.mrb[0].mxu1 }
 0x123   : > { %1347 = vst [vmem:[%s2131_s27] sm:$0xff] %v897_v17  ;;  %1379 = vst [vmem:[%s2131_s27 + $0x100] sm:$0xff] %v1025_v18  ;;  %v899_v19 = vpop.f32.mrb[1].mxu0  ;;  %v1027_v20 = vpop.f32.mrb[1].mxu1 }
 0x124   : > { %v900_v21 = vpop.f32.mrb[2].mxu0  ;;  %v1028_v22 = vpop.f32.mrb[2].mxu1 }
 0x125   : > { %1348 = vst [vmem:[%s2131_s27 + $0x8] sm:$0xff] %v900_v21  ;;  %1380 = vst [vmem:[%s2131_s27 + $0x108] sm:$0xff] %v1028_v22  ;;  %v902_v23 = vpop.f32.mrb[3].mxu0  ;;  %v1030_v24 = vpop.f32.mrb[3].mxu1 }
 0x12a   : > { %v905_v25 = vpop.f32.mrb[4].mxu0  ;;  %v1033_v26 = vpop.f32.mrb[4].mxu1 }
 0x12b   : > { %1349 = vst [vmem:[%s2131_s27 + $0x10] sm:$0xff] %v905_v25  ;;  %1381 = vst [vmem:[%s2131_s27 + $0x110] sm:$0xff] %v1033_v26  ;;  %v907_v27 = vpop.f32.mrb[5].mxu0  ;;  %v1035_v28 = vpop.f32.mrb[5].mxu1 }
 0x12c   : > { %v908_v29 = vpop.f32.mrb[6].mxu0  ;;  %v1036_v30 = vpop.f32.mrb[6].mxu1 }
 0x12d   : > { %1350 = vst [vmem:[%s2131_s27 + $0x18] sm:$0xff] %v908_v29  ;;  %1382 = vst [vmem:[%s2131_s27 + $0x118] sm:$0xff] %v1036_v30  ;;  %v910_v31 = vpop.f32.mrb[7].mxu0  ;;  %v1038_v32 = vpop.f32.mrb[7].mxu1 }
 0x132   : > { %v913_v33 = vpop.f32.mrb[8].mxu0  ;;  %v1041_v34 = vpop.f32.mrb[8].mxu1 }
 0x133   : > { %1351 = vst [vmem:[%s2131_s27 + $0x20] sm:$0xff] %v913_v33  ;;  %1383 = vst [vmem:[%s2131_s27 + $0x120] sm:$0xff] %v1041_v34  ;;  %v915_v35 = vpop.f32.mrb[9].mxu0  ;;  %v1043_v36 = vpop.f32.mrb[9].mxu1 }
 0x134   : > { %v916_v37 = vpop.f32.mrb[10].mxu0  ;;  %v1044_v38 = vpop.f32.mrb[10].mxu1 }
 0x135   : > { %1352 = vst [vmem:[%s2131_s27 + $0x28] sm:$0xff] %v916_v37  ;;  %1384 = vst [vmem:[%s2131_s27 + $0x128] sm:$0xff] %v1044_v38  ;;  %v918_v39 = vpop.f32.mrb[11].mxu0  ;;  %v1046_v40 = vpop.f32.mrb[11].mxu1 }
 0x13a   : > { %v921_v41 = vpop.f32.mrb[12].mxu0  ;;  %v1049_v42 = vpop.f32.mrb[12].mxu1 }
 0x13b   : > { %1353 = vst [vmem:[%s2131_s27 + $0x30] sm:$0xff] %v921_v41  ;;  %1385 = vst [vmem:[%s2131_s27 + $0x130] sm:$0xff] %v1049_v42  ;;  %v923_v43 = vpop.f32.mrb[13].mxu0  ;;  %v1051_v44 = vpop.f32.mrb[13].mxu1 }
 0x13c   : > { %v924_v45 = vpop.f32.mrb[14].mxu0  ;;  %v1052_v46 = vpop.f32.mrb[14].mxu1 }
 0x13d   : > { %1354 = vst [vmem:[%s2131_s27 + $0x38] sm:$0xff] %v924_v45  ;;  %1386 = vst [vmem:[%s2131_s27 + $0x138] sm:$0xff] %v1052_v46  ;;  %v926_v47 = vpop.f32.mrb[15].mxu0  ;;  %v1054_v48 = vpop.f32.mrb[15].mxu1 }
 0x142   : > { %v929_v49 = vpop.f32.mrb[16].mxu0  ;;  %v1057_v50 = vpop.f32.mrb[16].mxu1 }
 0x143   : > { %1355 = vst [vmem:[%s2131_s27 + $0x40] sm:$0xff] %v929_v49  ;;  %1387 = vst [vmem:[%s2131_s27 + $0x140] sm:$0xff] %v1057_v50  ;;  %v931_v51 = vpop.f32.mrb[17].mxu0  ;;  %v1059_v52 = vpop.f32.mrb[17].mxu1 }
 0x144   : > { %v932_v53 = vpop.f32.mrb[18].mxu0  ;;  %v1060_v54 = vpop.f32.mrb[18].mxu1 }
 0x145   : > { %1356 = vst [vmem:[%s2131_s27 + $0x48] sm:$0xff] %v932_v53  ;;  %1388 = vst [vmem:[%s2131_s27 + $0x148] sm:$0xff] %v1060_v54  ;;  %v934_v55 = vpop.f32.mrb[19].mxu0  ;;  %v1062_v56 = vpop.f32.mrb[19].mxu1 }
 0x14a   : > { %v937_v57 = vpop.f32.mrb[20].mxu0  ;;  %v1065_v58 = vpop.f32.mrb[20].mxu1 }
 0x14b   : > { %1357 = vst [vmem:[%s2131_s27 + $0x50] sm:$0xff] %v937_v57  ;;  %1389 = vst [vmem:[%s2131_s27 + $0x150] sm:$0xff] %v1065_v58  ;;  %v939_v59 = vpop.f32.mrb[21].mxu0  ;;  %v1067_v60 = vpop.f32.mrb[21].mxu1 }
 0x14c   : > { %v940_v61 = vpop.f32.mrb[22].mxu0  ;;  %v1068_v62 = vpop.f32.mrb[22].mxu1 }
 0x14d   : > { %1358 = vst [vmem:[%s2131_s27 + $0x58] sm:$0xff] %v940_v61  ;;  %1390 = vst [vmem:[%s2131_s27 + $0x158] sm:$0xff] %v1068_v62  ;;  %v942_v63 = vpop.f32.mrb[23].mxu0  ;;  %v1070_v0 = vpop.f32.mrb[23].mxu1 }
 0x152   : > { %v945_v1 = vpop.f32.mrb[24].mxu0  ;;  %v1073_v2 = vpop.f32.mrb[24].mxu1 }
 0x153   : > { %1359 = vst [vmem:[%s2131_s27 + $0x60] sm:$0xff] %v945_v1  ;;  %1391 = vst [vmem:[%s2131_s27 + $0x160] sm:$0xff] %v1073_v2  ;;  %v947_v3 = vpop.f32.mrb[25].mxu0  ;;  %v1075_v4 = vpop.f32.mrb[25].mxu1 }
 0x154   : > { %v948_v5 = vpop.f32.mrb[26].mxu0  ;;  %v1076_v6 = vpop.f32.mrb[26].mxu1 }
 0x155   : > { %1360 = vst [vmem:[%s2131_s27 + $0x68] sm:$0xff] %v948_v5  ;;  %1392 = vst [vmem:[%s2131_s27 + $0x168] sm:$0xff] %v1076_v6  ;;  %v950_v7 = vpop.f32.mrb[27].mxu0  ;;  %v1078_v8 = vpop.f32.mrb[27].mxu1 }
 0x15a   : > { %v953_v9 = vpop.f32.mrb[28].mxu0  ;;  %v1081_v10 = vpop.f32.mrb[28].mxu1 }
 0x15b   : > { %1361 = vst [vmem:[%s2131_s27 + $0x70] sm:$0xff] %v953_v9  ;;  %1393 = vst [vmem:[%s2131_s27 + $0x170] sm:$0xff] %v1081_v10  ;;  %v955_v11 = vpop.f32.mrb[29].mxu0  ;;  %v1083_v12 = vpop.f32.mrb[29].mxu1 }
 0x15c   : > { %v956_v13 = vpop.f32.mrb[30].mxu0  ;;  %v1084_v14 = vpop.f32.mrb[30].mxu1 }
 0x15d   : > { %1362 = vst [vmem:[%s2131_s27 + $0x78] sm:$0xff] %v956_v13  ;;  %1394 = vst [vmem:[%s2131_s27 + $0x178] sm:$0xff] %v1084_v14  ;;  %v958_v15 = vpop.f32.mrb[31].mxu0  ;;  %v1086_v16 = vpop.f32.mrb[31].mxu1 }
 0x162   : > { %v961_v17 = vpop.f32.mrb[32].mxu0  ;;  %v1089_v18 = vpop.f32.mrb[32].mxu1 }
 0x163   : > { %1363 = vst [vmem:[%s2131_s27 + $0x80] sm:$0xff] %v961_v17  ;;  %1395 = vst [vmem:[%s2131_s27 + $0x180] sm:$0xff] %v1089_v18  ;;  %v963_v19 = vpop.f32.mrb[33].mxu0  ;;  %v1091_v20 = vpop.f32.mrb[33].mxu1 }
 0x164   : > { %v964_v21 = vpop.f32.mrb[34].mxu0  ;;  %v1092_v22 = vpop.f32.mrb[34].mxu1 }
 0x165   : > { %1364 = vst [vmem:[%s2131_s27 + $0x88] sm:$0xff] %v964_v21  ;;  %1396 = vst [vmem:[%s2131_s27 + $0x188] sm:$0xff] %v1092_v22  ;;  %v966_v23 = vpop.f32.mrb[35].mxu0  ;;  %v1094_v24 = vpop.f32.mrb[35].mxu1 }
 0x16a   : > { %v969_v25 = vpop.f32.mrb[36].mxu0  ;;  %v1097_v26 = vpop.f32.mrb[36].mxu1 }
 0x16b   : > { %1365 = vst [vmem:[%s2131_s27 + $0x90] sm:$0xff] %v969_v25  ;;  %1397 = vst [vmem:[%s2131_s27 + $0x190] sm:$0xff] %v1097_v26  ;;  %v971_v27 = vpop.f32.mrb[37].mxu0  ;;  %v1099_v28 = vpop.f32.mrb[37].mxu1 }
 0x16c   : > { %v972_v29 = vpop.f32.mrb[38].mxu0  ;;  %v1100_v30 = vpop.f32.mrb[38].mxu1 }
 0x16d   : > { %1366 = vst [vmem:[%s2131_s27 + $0x98] sm:$0xff] %v972_v29  ;;  %1398 = vst [vmem:[%s2131_s27 + $0x198] sm:$0xff] %v1100_v30  ;;  %v974_v31 = vpop.f32.mrb[39].mxu0  ;;  %v1102_v32 = vpop.f32.mrb[39].mxu1 }
 0x172   : > { %v977_v33 = vpop.f32.mrb[40].mxu0  ;;  %v1105_v34 = vpop.f32.mrb[40].mxu1 }
 0x173   : > { %1367 = vst [vmem:[%s2131_s27 + $0xa0] sm:$0xff] %v977_v33  ;;  %1399 = vst [vmem:[%s2131_s27 + $0x1a0] sm:$0xff] %v1105_v34  ;;  %v979_v35 = vpop.f32.mrb[41].mxu0  ;;  %v1107_v36 = vpop.f32.mrb[41].mxu1 }
 0x174   : > { %v980_v37 = vpop.f32.mrb[42].mxu0  ;;  %v1108_v38 = vpop.f32.mrb[42].mxu1 }
 0x175   : > { %1368 = vst [vmem:[%s2131_s27 + $0xa8] sm:$0xff] %v980_v37  ;;  %1400 = vst [vmem:[%s2131_s27 + $0x1a8] sm:$0xff] %v1108_v38  ;;  %v982_v39 = vpop.f32.mrb[43].mxu0  ;;  %v1110_v40 = vpop.f32.mrb[43].mxu1 }
 0x17a   : > { %v985_v41 = vpop.f32.mrb[44].mxu0  ;;  %v1113_v42 = vpop.f32.mrb[44].mxu1 }
 0x17b   : > { %1369 = vst [vmem:[%s2131_s27 + $0xb0] sm:$0xff] %v985_v41  ;;  %1401 = vst [vmem:[%s2131_s27 + $0x1b0] sm:$0xff] %v1113_v42  ;;  %v987_v43 = vpop.f32.mrb[45].mxu0  ;;  %v1115_v44 = vpop.f32.mrb[45].mxu1 }
 0x17c   : > { %v988_v45 = vpop.f32.mrb[46].mxu0  ;;  %v1116_v46 = vpop.f32.mrb[46].mxu1 }
 0x17d   : > { %1370 = vst [vmem:[%s2131_s27 + $0xb8] sm:$0xff] %v988_v45  ;;  %1402 = vst [vmem:[%s2131_s27 + $0x1b8] sm:$0xff] %v1116_v46  ;;  %v990_v47 = vpop.f32.mrb[47].mxu0  ;;  %v1118_v48 = vpop.f32.mrb[47].mxu1 }
 0x182   : > { %v993_v49 = vpop.f32.mrb[48].mxu0  ;;  %v1121_v50 = vpop.f32.mrb[48].mxu1 }
 0x183   : > { %1371 = vst [vmem:[%s2131_s27 + $0xc0] sm:$0xff] %v993_v49  ;;  %1403 = vst [vmem:[%s2131_s27 + $0x1c0] sm:$0xff] %v1121_v50  ;;  %v995_v51 = vpop.f32.mrb[49].mxu0  ;;  %v1123_v52 = vpop.f32.mrb[49].mxu1 }
 0x184   : > { %v996_v53 = vpop.f32.mrb[50].mxu0  ;;  %v1124_v54 = vpop.f32.mrb[50].mxu1 }
 0x185   : > { %1372 = vst [vmem:[%s2131_s27 + $0xc8] sm:$0xff] %v996_v53  ;;  %1404 = vst [vmem:[%s2131_s27 + $0x1c8] sm:$0xff] %v1124_v54  ;;  %v998_v55 = vpop.f32.mrb[51].mxu0  ;;  %v1126_v56 = vpop.f32.mrb[51].mxu1 }
 0x18a   : > { %v1001_v57 = vpop.f32.mrb[52].mxu0  ;;  %v1129_v58 = vpop.f32.mrb[52].mxu1 }
 0x18b   : > { %1373 = vst [vmem:[%s2131_s27 + $0xd0] sm:$0xff] %v1001_v57  ;;  %1405 = vst [vmem:[%s2131_s27 + $0x1d0] sm:$0xff] %v1129_v58  ;;  %v1003_v59 = vpop.f32.mrb[53].mxu0  ;;  %v1131_v60 = vpop.f32.mrb[53].mxu1 }
 0x18c   : > { %v1004_v61 = vpop.f32.mrb[54].mxu0  ;;  %v1132_v62 = vpop.f32.mrb[54].mxu1 }
 0x18d   : > { %1374 = vst [vmem:[%s2131_s27 + $0xd8] sm:$0xff] %v1004_v61  ;;  %1406 = vst [vmem:[%s2131_s27 + $0x1d8] sm:$0xff] %v1132_v62  ;;  %v1006_v63 = vpop.f32.mrb[55].mxu0  ;;  %v1134_v0 = vpop.f32.mrb[55].mxu1 }
 0x192   : > { %v1009_v1 = vpop.f32.mrb[56].mxu0  ;;  %v1137_v2 = vpop.f32.mrb[56].mxu1 }
 0x193   : > { %1375 = vst [vmem:[%s2131_s27 + $0xe0] sm:$0xff] %v1009_v1  ;;  %1407 = vst [vmem:[%s2131_s27 + $0x1e0] sm:$0xff] %v1137_v2  ;;  %v1011_v3 = vpop.f32.mrb[57].mxu0  ;;  %v1139_v4 = vpop.f32.mrb[57].mxu1 }
 0x194   : > { %v1012_v5 = vpop.f32.mrb[58].mxu0  ;;  %v1140_v6 = vpop.f32.mrb[58].mxu1 }
 0x195   : > { %1376 = vst [vmem:[%s2131_s27 + $0xe8] sm:$0xff] %v1012_v5  ;;  %1408 = vst [vmem:[%s2131_s27 + $0x1e8] sm:$0xff] %v1140_v6  ;;  %v1014_v7 = vpop.f32.mrb[59].mxu0  ;;  %v1142_v8 = vpop.f32.mrb[59].mxu1 }
 0x19a   : > { %v1017_v9 = vpop.f32.mrb[60].mxu0  ;;  %v1145_v10 = vpop.f32.mrb[60].mxu1 }
 0x19b   : > { %1377 = vst [vmem:[%s2131_s27 + $0xf0] sm:$0xff] %v1017_v9  ;;  %1409 = vst [vmem:[%s2131_s27 + $0x1f0] sm:$0xff] %v1145_v10  ;;  %v1019_v11 = vpop.f32.mrb[61].mxu0  ;;  %v1147_v12 = vpop.f32.mrb[61].mxu1 }
 0x19c   : > { %v1020_v13 = vpop.f32.mrb[62].mxu0  ;;  %v1148_v14 = vpop.f32.mrb[62].mxu1 }
 0x19d   : > { %1378 = vst [vmem:[%s2131_s27 + $0xf8] sm:$0xff] %v1020_v13  ;;  %1410 = vst [vmem:[%s2131_s27 + $0x1f8] sm:$0xff] %v1148_v14  ;;  %v1022_v15 = vpop.f32.mrb[63].mxu0  ;;  %v1150_v16 = vpop.f32.mrb[63].mxu1 }
 0x19e   : > { %1837 = shalt.err (!%p1834_p5)
}
 0x19f   : > { %s1838_s8 = scalar_lea.hbm %s2198_s3, 8192  ;;  %s1842_s20 = scalar_lea.hbm %s2256_s2, 32768 }
 0x1a0   : > { %p1839_p6 = scmp.ne.s32.totalorder %s2198_s3, %s1838_s8  ;;  %p1843_p10 = scmp.lt.u32.totalorder %s2198_s3, %s2256_s2 }
 0x1a1   : > { %p1844_p11 = scmp.lt.u32.totalorder %s1842_s20, %s1838_s8  ;;  %p1846_p13 = scmp.lt.u32.totalorder %s1838_s8, %s2198_s3 }
 0x1a2   : > { %p1840_p7 = pnand %p1839_p6, %p1963_p4 }
 0x1a3   : > { %p1845_p12 = por %p1844_p11, %p1843_p10 }
 0x1a4   : > { %p1841_p9 = pneg %p1840_p7 }
 0x1a5   : > { %p1847_p0 = por %p1846_p13, %p1845_p12 }
 0x1a7   : > { %p1848_p1 = pnand %p1847_p0, %p1841_p9 }
 0x1a9   : > { %1851 = shalt.err (!%p1848_p1)
}
 0x1aa   : > { %s1906_s25 = smov 128   ;;  %s1907_s26 = smov 8  }
 0x1ab   : > { %1654 = dma.vmem_to_hbm [thread:$0]  (%p1963_p4), %s2200_s28, 8192, %s2198_s3, %s2208_s12, %s1906_s25, %s1906_s25, %s1907_s26  }
 0x1ac PF: > { %p1660_p2 = scmp.ge.s32.totalorder %s1902_s14, 2  ;;  %s1441_s27 = sand.u32 1, %s1882_s9  }
 0x1ad   : > { %s1442_s15 = scalar_lea.sflag [#allocation4], %s1441_s27 }
 0x1ae   : > { %p1657_p3 = pnand %p1660_p2, %p1970_p8 }
 0x1b0   : > { %1877 = dma.done.wait (!%p1657_p3), %s1442_s15, 8192  }
 0x1b1   : > { %1879 = vsyncadd (!%p1657_p3), %s1442_s15, 4294959104  ;;  %s15_s14 = sadd.s32 1, %s1902_s14   ;;  %s2259_s9 = smov %s1886_s10 }
 0x1b2   : > { %p12_p5 = scmp.ge.s32.totalorder %s15_s14, 6   ;;  %s2260_s10 = smov %s1890_s11 }
 0x1b3   : > { %s2261_s11 = smov %s1976_s22  ;;  %s2262_s12 = smov %s1898_s13 }
 0x1b4   : > { %s2263_s13 = smov %s2265_s17  ;;  %14 = sbr.rel (!%p12_p5) target bundleno = 4 (0x4), region = 74 }
 0x1bb   :  { %1447 = vsyncpa [#allocation4], 1 }
 0x1bc   :  { %1449 = vsyncpa [#allocation4 + $0x1], 1 }

</bundles_post_ra>
